<compile_context>
chip_gen: v7x
topology: tpu7x:2x2x1
jax: 0.10.0
libtpu: 0.0.40
codegen_flags: <defaults>
</compile_context>

<pallas_src>
import math

import numpy as np
import jax
import jax.numpy as jnp
from jax.experimental import pallas as pl
from jax.experimental.pallas import tpu as pltpu


# ----------------------------- host-side helpers (one-time prep) -----------------------------

def fourier_basis_values(n_basis, n_points):
    """Fourier basis on [0,1] evaluated on a uniform grid -> (n_basis, n_points)."""
    t = np.linspace(0.0, 1.0, n_points)
    vals = [np.ones_like(t)]                      # constant term (period = 1)
    k = 1
    while len(vals) < n_basis:
        vals.append(np.sqrt(2.0) * np.sin(2.0 * np.pi * k * t))
        if len(vals) < n_basis:
            vals.append(np.sqrt(2.0) * np.cos(2.0 * np.pi * k * t))
        k += 1
    return np.stack(vals, axis=0).astype(np.float32)


def trapz_weights(n):
    """Quadrature weights of torch.trapezoid over linspace(0,1,n)."""
    dx = 1.0 / (n - 1)
    w = np.full((n,), dx, dtype=np.float64)
    w[0] = dx / 2.0
    w[-1] = dx / 2.0
    return w


NVEC_ROWS = 16  # padded row count of the packed parameter-vector slab (rows 0..9 used)


def prepare_params(p, structure, x_dim):
    """One-time host prep: fuse the head into a single matrix, pack small vectors, move to device."""
    assert len(p["ff_w"]) == 3, "kernel is specialized for 2 FF hidden layers + final linear"
    func = structure["func"]
    sc = structure["scalar"]
    H = int(np.asarray(p["bias"]).shape[0])

    # --- fused head matrix: trapz weights folded into phi, then projected onto hidden ---
    wcat = np.zeros((x_dim, H), dtype=np.float64)
    for k, (s, e) in enumerate(func):
        T = e - s
        w = trapz_weights(T)                                           # (T,)
        phi = np.asarray(p["phi"][k], np.float64)                      # (M, T)
        fp = np.asarray(p["functional_params"][k], np.float64)         # (H, M)
        wcat[s:e, :] = (phi * w[None, :]).T @ fp.T                     # (T, H)
    wcat[sc[0]:sc[1], :] = np.asarray(p["scalar_params"], np.float64).T

    H1 = int(np.asarray(p["ff_w"][0]).shape[0])
    H2 = int(np.asarray(p["ff_w"][1]).shape[0])
    C = int(np.asarray(p["ff_w"][2]).shape[0])
    hmax = max(H, H1, H2, C)

    # --- pack all per-feature vectors into one slab (one DMA) ---
    vecs = np.zeros((NVEC_ROWS, hmax), np.float32)

    def put(row, v):
        v = np.asarray(v, np.float32).reshape(-1)
        vecs[row, : v.shape[0]] = v

    put(0, p["bias"]); put(1, p["ln_w"]); put(2, p["ln_b"])
    put(3, p["ff_b"][0]); put(4, p["alpha"][0]); put(5, p["beta"][0])
    put(6, p["ff_b"][1]); put(7, p["alpha"][1]); put(8, p["beta"][1])
    put(9, p["ff_b"][2])

    return dict(
        wcat=jnp.asarray(wcat, jnp.float32),
        vecs=jnp.asarray(vecs),
        w1t=jnp.asarray(np.asarray(p["ff_w"][0], np.float32).T),
        w2t=jnp.asarray(np.asarray(p["ff_w"][1], np.float32).T),
        w3t=jnp.asarray(np.asarray(p["ff_w"][2], np.float32).T),
    )


# ----------------------------------- the Pallas kernel --------------------------------------

def _custom_layernorm(x, alpha, beta, eps=1e-6):
    """Models.LayerNorm: sample std (unbiased, n-1), eps added to std, affine."""
    d = x.shape[-1]
    mu = jnp.mean(x, axis=-1, keepdims=True)
    var = jnp.sum((x - mu) ** 2, axis=-1, keepdims=True) / (d - 1)
    std = jnp.sqrt(var) + eps
    return (x - mu) / std * alpha + beta


def fnn_kernel(x_ref, wcat_ref, vec_ref, w1_ref, w2_ref, w3_ref, out_ref):
    f32 = jnp.float32
    H = wcat_ref.shape[1]
    H1 = w1_ref.shape[1]
    H2 = w2_ref.shape[1]
    C = w3_ref.shape[1]

    # single load of the packed parameter-vector slab; static row/col slices afterwards
    vecs = vec_ref[...]
    bias, lnw, lnb = vecs[0:1, :H], vecs[1:2, :H], vecs[2:3, :H]
    b1, a1, be1 = vecs[3:4, :H1], vecs[4:5, :H1], vecs[5:6, :H1]
    b2, a2, be2 = vecs[6:7, :H2], vecs[7:8, :H2], vecs[8:9, :H2]
    b3 = vecs[9:10, :C]

    # --- fused head: functional trapezoid integrals + projections + scalar part, one matmul ---
    hidden = jnp.dot(x_ref[...], wcat_ref[...], preferred_element_type=f32) + bias    # (TB, H)

    # --- nn.LayerNorm (biased variance, eps inside sqrt) + relu ---
    mu = jnp.mean(hidden, axis=-1, keepdims=True)
    var = jnp.mean((hidden - mu) ** 2, axis=-1, keepdims=True)
    t = jnp.maximum((hidden - mu) * jax.lax.rsqrt(var + 1e-5) * lnw + lnb, 0.0)

    # --- FeedForward ('advanced'), block 1 ---
    t = jnp.dot(t, w1_ref[...], preferred_element_type=f32) + b1
    t = jnp.maximum(t + _custom_layernorm(t, a1, be1), 0.0)          # dropout p=0 -> identity

    # --- FeedForward block 2 ---
    t = jnp.dot(t, w2_ref[...], preferred_element_type=f32) + b2
    t = jnp.maximum(t + _custom_layernorm(t, a2, be2), 0.0)

    # --- final linear, Identity last layer ---
    out_ref[...] = jnp.dot(t, w3_ref[...], preferred_element_type=f32) + b3


# ------------------------------------- jitted wrapper ----------------------------------------

@jax.jit
def fnn_forward_pallas(x, wcat, vecs, w1t, w2t, w3t):
    B, D = x.shape
    H = wcat.shape[1]
    H1 = w1t.shape[1]
    H2 = w2t.shape[1]
    C = w3t.shape[1]

    # batch tiling: one "parallel" grid axis; weights are grid-invariant (index_map -> (0,0)).
    TB = B if B <= 256 else 256
    grid = (pl.cdiv(B, TB),)

    in_specs = [
        pl.BlockSpec((TB, D), lambda i: (i, 0)),        # x tile streams over the grid
        pl.BlockSpec((D, H), lambda i: (0, 0)),         # fused head weights
        pl.BlockSpec(vecs.shape, lambda i: (0, 0)),     # packed parameter vectors (one DMA)
        pl.BlockSpec((H, H1), lambda i: (0, 0)),
        pl.BlockSpec((H1, H2), lambda i: (0, 0)),
        pl.BlockSpec((H2, C), lambda i: (0, 0)),
    ]
    out_specs = pl.BlockSpec((TB, C), lambda i: (i, 0))

    return pl.pallas_call(
        fnn_kernel,
        out_shape=jax.ShapeDtypeStruct((B, C), jnp.float32),
        grid=grid,
        in_specs=in_specs,
        out_specs=out_specs,
        compiler_params=pltpu.CompilerParams(dimension_semantics=("parallel",)),
    )(x, wcat, vecs, w1t, w2t, w3t)


# --------------------------------- pure-JAX reference ----------------------------------------

def _trapz_last(y, xgrid):
    dx = xgrid[1:] - xgrid[:-1]
    return jnp.sum((y[..., 1:] + y[..., :-1]) * 0.5 * dx, axis=-1)


def fnn_forward_ref(x, p, structure):
    func = structure["func"]
    sc = structure["scalar"]
    B = x.shape[0]
    H = p["bias"].shape[0]
    summand = jnp.zeros((B, H), jnp.float32)
    for k, (s, e) in enumerate(func):
        T = e - s
        xv = x[:, s:e]
        phi = jnp.asarray(p["phi"][k])                               # (M, T)
        lin = jnp.linspace(0.0, 1.0, T).astype(jnp.float32)
        prod = jnp.einsum("ij,mj->imj", xv, phi)                     # (B, M, T)
        integral = _trapz_last(prod, lin)                            # (B, M)
        summand = summand + jnp.einsum("hm,im->ih", p["functional_params"][k], integral)
    xs = x[:, sc[0]:sc[1]]
    summand = summand + jnp.einsum("hj,ij->ih", p["scalar_params"], xs) + p["bias"][None, :]
    mu = jnp.mean(summand, -1, keepdims=True)
    var = jnp.mean((summand - mu) ** 2, -1, keepdims=True)
    h = (summand - mu) / jnp.sqrt(var + 1e-5) * p["ln_w"] + p["ln_b"]
    t = jax.nn.relu(h)
    for i in range(len(p["ff_w"]) - 1):
        t = t @ p["ff_w"][i].T + p["ff_b"][i]
        d = t.shape[-1]
        mu = jnp.mean(t, -1, keepdims=True)
        std = jnp.sqrt(jnp.sum((t - mu) ** 2, -1, keepdims=True) / (d - 1)) + 1e-6
        t = t + (t - mu) / std * p["alpha"][i] + p["beta"][i]
        t = jax.nn.relu(t)
    return t @ p["ff_w"][-1].T + p["ff_b"][-1]


# --------------------------------- deterministic params --------------------------------------

def init_params(key, structure, phi_nbasis, sub_hidden, num_classes):
    func = structure["func"]
    n_func = len(func)
    n_scalar = structure["scalar"][1] - structure["scalar"][0]
    H = sub_hidden[0]
    bound = 1.0 / math.sqrt(H)
    keys = iter(jax.random.split(key, 64))

    p = {}
    p["phi"] = [fourier_basis_values(phi_nbasis[k], func[k][1] - func[k][0])
                for k in range(n_func)]
    p["functional_params"] = [jax.random.uniform(next(keys), (H, phi_nbasis[k]),
                                                 jnp.float32, -bound, bound)
                              for k in range(n_func)]
    p["scalar_params"] = jax.random.uniform(next(keys), (H, n_scalar), jnp.float32, -bound, bound)
    p["bias"] = jax.random.uniform(next(keys), (H,), jnp.float32, -bound, bound)
    p["ln_w"] = jnp.ones((H,), jnp.float32)        # nn.LayerNorm default init
    p["ln_b"] = jnp.zeros((H,), jnp.float32)

    dims = [H] + list(sub_hidden[1:]) + [num_classes]
    p["ff_w"], p["ff_b"] = [], []
    for i in range(1, len(dims)):
        fan_in = dims[i - 1]
        b = 1.0 / math.sqrt(fan_in)
        p["ff_w"].append(jax.random.uniform(next(keys), (dims[i], fan_in), jnp.float32, -b, b))
        p["ff_b"].append(jax.random.uniform(next(keys), (dims[i],), jnp.float32, -b, b))
    p["alpha"] = [jax.random.normal(next(keys), (h,), jnp.float32) for h in sub_hidden[1:]]
    p["beta"] = [jax.random.normal(next(keys), (h,), jnp.float32) for h in sub_hidden[1:]]
    return p


# ------------------------------------------ main ---------------------------------------------

if __name__ == "__main__":
    # two functional covariates (16 and 12 grid points) + 4 scalar covariates
    structure = {"func": [(0, 16), (16, 28)], "scalar": (28, 32)}
    phi_nbasis = [3, 3]
    sub_hidden = [32, 32, 32]
    num_classes = 1
    B = 8
    D = 32

    key = jax.random.PRNGKey(0)
    kx, kp = jax.random.split(key)
    x = jax.random.normal(kx, (B, D), jnp.float32)
    params = init_params(kp, structure, phi_nbasis, sub_hidden, num_classes)

    # one-time host prep (fuse head, pack vectors, move to device) -- outside the call path
    prepared = prepare_params(params, structure, x_dim=D)

    out = fnn_forward_pallas(x, **prepared)
    out = jax.block_until_ready(out)

    ref = fnn_forward_ref(x, params, structure)
    np.testing.assert_allclose(np.asarray(out), np.asarray(ref), rtol=1e-3, atol=1e-3)

    print("KERNEL_OK")
</pallas_src>

<mosaic_0001>
module attributes {stable_mosaic.version = 11 : i64} {
  func.func @fnn_kernel(%arg0: i32, %arg1: memref<8x32xf32, #tpu.memory_space<vmem>>, %arg2: memref<32x32xf32, #tpu.memory_space<vmem>>, %arg3: memref<16x32xf32, #tpu.memory_space<vmem>>, %arg4: memref<32x32xf32, #tpu.memory_space<vmem>>, %arg5: memref<32x32xf32, #tpu.memory_space<vmem>>, %arg6: memref<32x1xf32, #tpu.memory_space<vmem>>, %arg7: memref<8x1xf32, #tpu.memory_space<vmem>>) attributes {dimension_semantics = [#tpu.dimension_semantics<parallel>], iteration_bounds = array<i64: 1>, scalar_prefetch = 0 : i64, scratch_operands = 0 : i64, tpu.core_type = #tpu.core_type<tc>, window_params = [{transform_indices = @transform_0, window_bounds = array<i64: 8, 32>}, {pipeline_mode = #tpu.pipeline_mode<synchronous>, transform_indices = @transform_1, window_bounds = array<i64: 32, 32>}, {pipeline_mode = #tpu.pipeline_mode<synchronous>, transform_indices = @transform_2, window_bounds = array<i64: 16, 32>}, {pipeline_mode = #tpu.pipeline_mode<synchronous>, transform_indices = @transform_3, window_bounds = array<i64: 32, 32>}, {pipeline_mode = #tpu.pipeline_mode<synchronous>, transform_indices = @transform_4, window_bounds = array<i64: 32, 32>}, {pipeline_mode = #tpu.pipeline_mode<synchronous>, transform_indices = @transform_5, window_bounds = array<i64: 32, 1>}, {transform_indices = @transform_6, window_bounds = array<i64: 8, 1>}]} {
    %c0 = arith.constant 0 : index
    %c0_0 = arith.constant 0 : index
    %0 = vector.load %arg3[%c0, %c0_0] : memref<16x32xf32, #tpu.memory_space<vmem>>, vector<16x32xf32>
    %1 = vector.extract_strided_slice %0 {offsets = [0, 0], sizes = [1, 32], strides = [1, 1]} : vector<16x32xf32> to vector<1x32xf32>
    %2 = vector.extract_strided_slice %0 {offsets = [1, 0], sizes = [1, 32], strides = [1, 1]} : vector<16x32xf32> to vector<1x32xf32>
    %3 = vector.extract_strided_slice %0 {offsets = [2, 0], sizes = [1, 32], strides = [1, 1]} : vector<16x32xf32> to vector<1x32xf32>
    %4 = vector.extract_strided_slice %0 {offsets = [3, 0], sizes = [1, 32], strides = [1, 1]} : vector<16x32xf32> to vector<1x32xf32>
    %5 = vector.extract_strided_slice %0 {offsets = [4, 0], sizes = [1, 32], strides = [1, 1]} : vector<16x32xf32> to vector<1x32xf32>
    %6 = vector.extract_strided_slice %0 {offsets = [5, 0], sizes = [1, 32], strides = [1, 1]} : vector<16x32xf32> to vector<1x32xf32>
    %7 = vector.extract_strided_slice %0 {offsets = [6, 0], sizes = [1, 32], strides = [1, 1]} : vector<16x32xf32> to vector<1x32xf32>
    %8 = vector.extract_strided_slice %0 {offsets = [7, 0], sizes = [1, 32], strides = [1, 1]} : vector<16x32xf32> to vector<1x32xf32>
    %9 = vector.extract_strided_slice %0 {offsets = [8, 0], sizes = [1, 32], strides = [1, 1]} : vector<16x32xf32> to vector<1x32xf32>
    %10 = vector.extract_strided_slice %0 {offsets = [9, 0], sizes = [1, 1], strides = [1, 1]} : vector<16x32xf32> to vector<1x1xf32>
    %c0_1 = arith.constant 0 : index
    %c0_2 = arith.constant 0 : index
    %11 = vector.load %arg1[%c0_1, %c0_2] : memref<8x32xf32, #tpu.memory_space<vmem>>, vector<8x32xf32>
    %c0_3 = arith.constant 0 : index
    %c0_4 = arith.constant 0 : index
    %12 = vector.load %arg2[%c0_3, %c0_4] : memref<32x32xf32, #tpu.memory_space<vmem>>, vector<32x32xf32>
    %cst = arith.constant dense<0.000000e+00> : vector<8x32xf32>
    %13 = tpu.matmul %11, %12, %cst {dimension_numbers = #tpu.dot_dimension_numbers<[1], [0], [0], [1], [0, 0, 1, 1], [], []>} : vector<8x32xf32>, vector<32x32xf32>, vector<8x32xf32> -> vector<8x32xf32>
    %14 = vector.broadcast %1 : vector<1x32xf32> to vector<8x32xf32>
    %15 = arith.addf %13, %14 : vector<8x32xf32>
    %cst_5 = arith.constant dense<0.000000e+00> : vector<8xf32>
    %16 = vector.multi_reduction <add>, %15, %cst_5 [1] : vector<8x32xf32> to vector<8xf32>
    %17 = vector.shape_cast %16 : vector<8xf32> to vector<8x1xf32>
    %cst_6 = arith.constant 3.200000e+01 : f32
    %18 = vector.broadcast %cst_6 : f32 to vector<8x1xf32>
    %19 = arith.divf %17, %18 : vector<8x1xf32>
    %20 = vector.broadcast %19 : vector<8x1xf32> to vector<8x32xf32>
    %21 = arith.subf %15, %20 : vector<8x32xf32>
    %22 = arith.mulf %21, %21 : vector<8x32xf32>
    %cst_7 = arith.constant dense<0.000000e+00> : vector<8xf32>
    %23 = vector.multi_reduction <add>, %22, %cst_7 [1] : vector<8x32xf32> to vector<8xf32>
    %24 = vector.shape_cast %23 : vector<8xf32> to vector<8x1xf32>
    %cst_8 = arith.constant 3.200000e+01 : f32
    %25 = vector.broadcast %cst_8 : f32 to vector<8x1xf32>
    %26 = arith.divf %24, %25 : vector<8x1xf32>
    %27 = vector.broadcast %19 : vector<8x1xf32> to vector<8x32xf32>
    %28 = arith.subf %15, %27 : vector<8x32xf32>
    %cst_9 = arith.constant 9.99999974E-6 : f32
    %29 = vector.broadcast %cst_9 : f32 to vector<8x1xf32>
    %30 = arith.addf %26, %29 : vector<8x1xf32>
    %31 = math.rsqrt %30 : vector<8x1xf32>
    %32 = vector.broadcast %31 : vector<8x1xf32> to vector<8x32xf32>
    %33 = arith.mulf %28, %32 : vector<8x32xf32>
    %34 = vector.broadcast %2 : vector<1x32xf32> to vector<8x32xf32>
    %35 = arith.mulf %33, %34 : vector<8x32xf32>
    %36 = vector.broadcast %3 : vector<1x32xf32> to vector<8x32xf32>
    %37 = arith.addf %35, %36 : vector<8x32xf32>
    %cst_10 = arith.constant 0.000000e+00 : f32
    %38 = vector.broadcast %cst_10 : f32 to vector<8x32xf32>
    %39 = arith.maximumf %37, %38 : vector<8x32xf32>
    %c0_11 = arith.constant 0 : index
    %c0_12 = arith.constant 0 : index
    %40 = vector.load %arg4[%c0_11, %c0_12] : memref<32x32xf32, #tpu.memory_space<vmem>>, vector<32x32xf32>
    %cst_13 = arith.constant dense<0.000000e+00> : vector<8x32xf32>
    %41 = tpu.matmul %39, %40, %cst_13 {dimension_numbers = #tpu.dot_dimension_numbers<[1], [0], [0], [1], [0, 0, 1, 1], [], []>} : vector<8x32xf32>, vector<32x32xf32>, vector<8x32xf32> -> vector<8x32xf32>
    %42 = vector.broadcast %4 : vector<1x32xf32> to vector<8x32xf32>
    %43 = arith.addf %41, %42 : vector<8x32xf32>
    %cst_14 = arith.constant dense<0.000000e+00> : vector<8xf32>
    %44 = vector.multi_reduction <add>, %43, %cst_14 [1] : vector<8x32xf32> to vector<8xf32>
    %45 = vector.shape_cast %44 : vector<8xf32> to vector<8x1xf32>
    %cst_15 = arith.constant 3.200000e+01 : f32
    %46 = vector.broadcast %cst_15 : f32 to vector<8x1xf32>
    %47 = arith.divf %45, %46 : vector<8x1xf32>
    %48 = vector.broadcast %47 : vector<8x1xf32> to vector<8x32xf32>
    %49 = arith.subf %43, %48 : vector<8x32xf32>
    %50 = arith.mulf %49, %49 : vector<8x32xf32>
    %cst_16 = arith.constant dense<0.000000e+00> : vector<8xf32>
    %51 = vector.multi_reduction <add>, %50, %cst_16 [1] : vector<8x32xf32> to vector<8xf32>
    %52 = vector.shape_cast %51 : vector<8xf32> to vector<8x1xf32>
    %cst_17 = arith.constant 3.100000e+01 : f32
    %53 = vector.broadcast %cst_17 : f32 to vector<8x1xf32>
    %54 = arith.divf %52, %53 : vector<8x1xf32>
    %55 = math.sqrt %54 : vector<8x1xf32>
    %cst_18 = arith.constant 9.99999997E-7 : f32
    %56 = vector.broadcast %cst_18 : f32 to vector<8x1xf32>
    %57 = arith.addf %55, %56 : vector<8x1xf32>
    %58 = vector.broadcast %47 : vector<8x1xf32> to vector<8x32xf32>
    %59 = arith.subf %43, %58 : vector<8x32xf32>
    %60 = vector.broadcast %57 : vector<8x1xf32> to vector<8x32xf32>
    %61 = arith.divf %59, %60 : vector<8x32xf32>
    %62 = vector.broadcast %5 : vector<1x32xf32> to vector<8x32xf32>
    %63 = arith.mulf %61, %62 : vector<8x32xf32>
    %64 = vector.broadcast %6 : vector<1x32xf32> to vector<8x32xf32>
    %65 = arith.addf %63, %64 : vector<8x32xf32>
    %66 = arith.addf %43, %65 : vector<8x32xf32>
    %cst_19 = arith.constant 0.000000e+00 : f32
    %67 = vector.broadcast %cst_19 : f32 to vector<8x32xf32>
    %68 = arith.maximumf %66, %67 : vector<8x32xf32>
    %c0_20 = arith.constant 0 : index
    %c0_21 = arith.constant 0 : index
    %69 = vector.load %arg5[%c0_20, %c0_21] : memref<32x32xf32, #tpu.memory_space<vmem>>, vector<32x32xf32>
    %cst_22 = arith.constant dense<0.000000e+00> : vector<8x32xf32>
    %70 = tpu.matmul %68, %69, %cst_22 {dimension_numbers = #tpu.dot_dimension_numbers<[1], [0], [0], [1], [0, 0, 1, 1], [], []>} : vector<8x32xf32>, vector<32x32xf32>, vector<8x32xf32> -> vector<8x32xf32>
    %71 = vector.broadcast %7 : vector<1x32xf32> to vector<8x32xf32>
    %72 = arith.addf %70, %71 : vector<8x32xf32>
    %cst_23 = arith.constant dense<0.000000e+00> : vector<8xf32>
    %73 = vector.multi_reduction <add>, %72, %cst_23 [1] : vector<8x32xf32> to vector<8xf32>
    %74 = vector.shape_cast %73 : vector<8xf32> to vector<8x1xf32>
    %cst_24 = arith.constant 3.200000e+01 : f32
    %75 = vector.broadcast %cst_24 : f32 to vector<8x1xf32>
    %76 = arith.divf %74, %75 : vector<8x1xf32>
    %77 = vector.broadcast %76 : vector<8x1xf32> to vector<8x32xf32>
    %78 = arith.subf %72, %77 : vector<8x32xf32>
    %79 = arith.mulf %78, %78 : vector<8x32xf32>
    %cst_25 = arith.constant dense<0.000000e+00> : vector<8xf32>
    %80 = vector.multi_reduction <add>, %79, %cst_25 [1] : vector<8x32xf32> to vector<8xf32>
    %81 = vector.shape_cast %80 : vector<8xf32> to vector<8x1xf32>
    %cst_26 = arith.constant 3.100000e+01 : f32
    %82 = vector.broadcast %cst_26 : f32 to vector<8x1xf32>
    %83 = arith.divf %81, %82 : vector<8x1xf32>
    %84 = math.sqrt %83 : vector<8x1xf32>
    %cst_27 = arith.constant 9.99999997E-7 : f32
    %85 = vector.broadcast %cst_27 : f32 to vector<8x1xf32>
    %86 = arith.addf %84, %85 : vector<8x1xf32>
    %87 = vector.broadcast %76 : vector<8x1xf32> to vector<8x32xf32>
    %88 = arith.subf %72, %87 : vector<8x32xf32>
    %89 = vector.broadcast %86 : vector<8x1xf32> to vector<8x32xf32>
    %90 = arith.divf %88, %89 : vector<8x32xf32>
    %91 = vector.broadcast %8 : vector<1x32xf32> to vector<8x32xf32>
    %92 = arith.mulf %90, %91 : vector<8x32xf32>
    %93 = vector.broadcast %9 : vector<1x32xf32> to vector<8x32xf32>
    %94 = arith.addf %92, %93 : vector<8x32xf32>
    %95 = arith.addf %72, %94 : vector<8x32xf32>
    %cst_28 = arith.constant 0.000000e+00 : f32
    %96 = vector.broadcast %cst_28 : f32 to vector<8x32xf32>
    %97 = arith.maximumf %95, %96 : vector<8x32xf32>
    %c0_29 = arith.constant 0 : index
    %c0_30 = arith.constant 0 : index
    %98 = vector.load %arg6[%c0_29, %c0_30] : memref<32x1xf32, #tpu.memory_space<vmem>>, vector<32x1xf32>
    %cst_31 = arith.constant dense<0.000000e+00> : vector<8x1xf32>
    %99 = tpu.matmul %97, %98, %cst_31 {dimension_numbers = #tpu.dot_dimension_numbers<[1], [0], [0], [1], [0, 0, 1, 1], [], []>} : vector<8x32xf32>, vector<32x1xf32>, vector<8x1xf32> -> vector<8x1xf32>
    %100 = vector.broadcast %10 : vector<1x1xf32> to vector<8x1xf32>
    %101 = arith.addf %99, %100 : vector<8x1xf32>
    %c0_32 = arith.constant 0 : index
    %c0_33 = arith.constant 0 : index
    %102 = vector.load %arg7[%c0_32, %c0_33] : memref<8x1xf32, #tpu.memory_space<vmem>>, vector<8x1xf32>
    tpu.vector_store %arg7[%c0_32, %c0_33], %101 {strides = array<i32>} : memref<8x1xf32, #tpu.memory_space<vmem>>, vector<8x1xf32>,
    return
  }
  func.func @transform_0(%arg0: i32) -> (i32, i32) {
    %c0_i32 = arith.constant 0 : i32
    %c0_i32_0 = arith.constant 0 : i32
    return %arg0, %c0_i32 : i32, i32
  }
  func.func @transform_1(%arg0: i32) -> (i32, i32) {
    %c0_i32 = arith.constant 0 : i32
    %c0_i32_0 = arith.constant 0 : i32
    %c0_i32_1 = arith.constant 0 : i32
    return %c0_i32, %c0_i32_0 : i32, i32
  }
  func.func @transform_2(%arg0: i32) -> (i32, i32) {
    %c0_i32 = arith.constant 0 : i32
    %c0_i32_0 = arith.constant 0 : i32
    %c0_i32_1 = arith.constant 0 : i32
    return %c0_i32, %c0_i32_0 : i32, i32
  }
  func.func @transform_3(%arg0: i32) -> (i32, i32) {
    %c0_i32 = arith.constant 0 : i32
    %c0_i32_0 = arith.constant 0 : i32
    %c0_i32_1 = arith.constant 0 : i32
    return %c0_i32, %c0_i32_0 : i32, i32
  }
  func.func @transform_4(%arg0: i32) -> (i32, i32) {
    %c0_i32 = arith.constant 0 : i32
    %c0_i32_0 = arith.constant 0 : i32
    %c0_i32_1 = arith.constant 0 : i32
    return %c0_i32, %c0_i32_0 : i32, i32
  }
  func.func @transform_5(%arg0: i32) -> (i32, i32) {
    %c0_i32 = arith.constant 0 : i32
    %c0_i32_0 = arith.constant 0 : i32
    %c0_i32_1 = arith.constant 0 : i32
    return %c0_i32, %c0_i32_0 : i32, i32
  }
  func.func @transform_6(%arg0: i32) -> (i32, i32) {
    %c0_i32 = arith.constant 0 : i32
    %c0_i32_0 = arith.constant 0 : i32
    return %arg0, %c0_i32 : i32, i32
  }
}

</mosaic_0001>

<bundles_post_ra>
// kernel: fnn_forward_pallas.1
= control target key start
LH: loop header
LB: loop body
LE: loop exit
PB: predicated region body
PF: predicated region fallthrough
CT: control target
= control target key end

     0   :  { %11 = vsyncpa [#allocation3], 0  ;;  %s836_s0 = inlined_call_operand.hbm [shape: f32[8,32], index: 0, kind: input, shape index: {}]   ;;  %s837_s1 = inlined_call_operand.vmem [shape: f32[32,32], index: 1, kind: input, shape index: {}]   ;;  %s838_s2 = inlined_call_operand.vmem [shape: f32[16,32], index: 2, kind: input, shape index: {}]   ;;  %s839_s3 = inlined_call_operand.hbm [shape: f32[32,32], index: 3, kind: input, shape index: {}]   ;;  %s840_s4 = inlined_call_operand.hbm [shape: f32[32,32], index: 4, kind: input, shape index: {}]   ;;  %s841_s5 = inlined_call_operand.vmem [shape: f32[32,1], index: 5, kind: input, shape index: {}]   ;;  %s842_s6 = inlined_call_operand.vmem [shape: f32[8,1], index: 6, kind: output, shape index: {}]  }
   0x1   :  { %12 = vsyncpa [#allocation5], 0  ;;  %s668_s21 = smov [#allocation4]   ;;  %s598_s25 = scalar_lea.hbm %s839_s3, 512 }
   0x2   :  { %s32_s22 = sshll.u32 %s668_s21, 4  ;;  %p599_p0 = scmp.ne.s32.totalorder %s839_s3, %s598_s25  ;;  %s33_s22 = int_to_ptr.vmem [resolvable:$true] %s32_s22 }
   0x3   :  { %p602_p1 = scmp.lt.u32.totalorder %s598_s25, %s839_s3 }
   0x5   :  { %p604_p2 = pnand %p602_p1, %p599_p0 }
   0x7   :  { %607 = shalt.err (!%p604_p2)
}
   0x8   :  { %s608_s30 = scalar_lea.vmem %s33_s22, 512  ;;  %p613_p4 = scmp.lt.s32.totalorder %s33_s22, %s33_s22 }
   0x9   :  { %p609_p3 = scmp.ne.s32.totalorder %s33_s22, %s608_s30  ;;  %p614_p5 = scmp.lt.s32.totalorder %s608_s30, %s608_s30 }
   0xb   :  { %p615_p6 = por %p614_p5, %p613_p4 }
   0xd   :  { %p616_p7 = pnand %p615_p6, %p609_p3 }
   0xf   :  { %619 = shalt.err (!%p616_p7)
}
  0x10   :  { %s669_s7 = smov 128   ;;  %s670_s8 = smov 8  }
  0x11   :  { %38 = dma.hbm_to_vmem [thread:$0]  %s839_s3, 512, %s33_s22, [#allocation5], %s669_s7, %s669_s7, %s670_s8  }
  0x12   :  { %s671_s11 = smov [#allocation2]   ;;  %s672_s13 = smov [#allocation6]  }
  0x13   :  { %s19_s12 = sshll.u32 %s671_s11, 4  ;;  %s44_s14 = sshll.u32 %s672_s13, 4  ;;  %s20_s12 = int_to_ptr.vmem [resolvable:$true] %s19_s12  ;;  %s45_s14 = int_to_ptr.vmem [resolvable:$true] %s44_s14 }
  0x14   :  { %s620_s17 = scalar_lea.hbm %s836_s0, 128 }
  0x15   :  { %p621_p8 = scmp.ne.s32.totalorder %s836_s0, %s620_s17  ;;  %p624_p9 = scmp.lt.u32.totalorder %s620_s17, %s836_s0 }
  0x17   :  { %p626_p10 = pnand %p624_p9, %p621_p8 }
  0x19   :  { %629 = shalt.err (!%p626_p10)
}
  0x1a   :  { %s630_s3 = scalar_lea.vmem %s20_s12, 128  ;;  %p635_p12 = scmp.lt.s32.totalorder %s20_s12, %s20_s12 }
  0x1b   :  { %p631_p11 = scmp.ne.s32.totalorder %s20_s12, %s630_s3  ;;  %p636_p13 = scmp.lt.s32.totalorder %s630_s3, %s630_s3 }
  0x1d   :  { %p637_p0 = por %p636_p13, %p635_p12 }
  0x1f   :  { %p638_p1 = pnand %p637_p0, %p631_p11 }
  0x21   :  { %641 = shalt.err (!%p638_p1)
}
  0x22   :  { %22 = dma.hbm_to_vmem [thread:$0]  %s836_s0, 128, %s20_s12, [#allocation3]  }
  0x23   :  { %s642_s26 = scalar_lea.hbm %s840_s4, 512 }
  0x24   :  { %p643_p2 = scmp.ne.s32.totalorder %s840_s4, %s642_s26  ;;  %p646_p3 = scmp.lt.u32.totalorder %s642_s26, %s840_s4 }
  0x26   :  { %p648_p4 = pnand %p646_p3, %p643_p2 }
  0x28   :  { %651 = shalt.err (!%p648_p4)
}
  0x29   :  { %s652_s9 = scalar_lea.vmem %s45_s14, 512  ;;  %p657_p6 = scmp.lt.s32.totalorder %s45_s14, %s45_s14 }
  0x2a   :  { %p653_p5 = scmp.ne.s32.totalorder %s45_s14, %s652_s9  ;;  %p658_p7 = scmp.lt.s32.totalorder %s652_s9, %s652_s9 }
  0x2c   :  { %p659_p8 = por %p658_p7, %p657_p6 }
  0x2e   :  { %p660_p9 = pnand %p659_p8, %p653_p5 }
  0x30   :  { %663 = shalt.err (!%p660_p9)
}
  0x31   :  { %50 = dma.hbm_to_vmem [thread:$0]  %s840_s4, 512, %s45_s14, [#allocation5], %s669_s7, %s669_s7, %s670_s8  }
  0x32   :  { %664 = dma.done.wait [#allocation3], 128  }
  0x33   :  { %665 = vsyncadd [#allocation3], 4294967168 }
  0x34   :  { %666 = dma.done.wait [#allocation5], 1024  }
  0x35   :  { %667 = vsyncadd [#allocation5], 4294966272  ;;  %v673_v0 = vmov 0.0|0.0   ;;  %vm674_vm0 = vmmov 0   ;;  %v675_v1 = vmov 0.0   ;;  %v65_v2 = vld [vmem:[%s837_s1] sm:$0xff]  ;;  %v69_v9 = vlaneseq }
  0x36   :  { %556 = vmatprep.subr.bf16.mxu0 %v673_v0  ;;  %520 = vmatprep.mubr.msk.f32.mxu0 %vm674_vm0, %v675_v1  ;;  %v66_v3 = vld [vmem:[%s837_s1 + $0x8] sm:$0xff]  ;;  %v67_v4 = vld [vmem:[%s837_s1 + $0x10] sm:$0xff]  ;;  %v68_v6 = vld [vmem:[%s837_s1 + $0x18] sm:$0xff]  ;;  %vm73_vm1 = vcmask 261120   ;;  %vm480_vm6 = vcmask 7168  }
  0x37   :  { %562 = vmatprep.subr.bf16.mxu1 %v673_v0  ;;  %531 = vmatprep.mubr.msk.f32.mxu1 %vm674_vm0, %v675_v1  ;;  %v557_v5 = vpack.c.bf16 %v66_v3, %v65_v2  ;;  %v560_v7 = vpack.c.bf16 %v68_v6, %v67_v4  ;;  %v64_v8 = vld [vmem:[#allocation2] sm:$0xff]  ;;  %v773_v10 = vshrl.u32 %v69_v9, 7  ;;  %v172_v23 = vld [vmem:[#allocation4] sm:$0xff]  ;;  %v173_v24 = vld [vmem:[#allocation4 + $0x8] sm:$0xff] }
  0x38   :  { %v779_v12 = vld [vmem:[%s838_s2] sm:$0xff]  ;;  %v174_v25 = vld [vmem:[#allocation4 + $0x10] sm:$0xff]  ;;  %v563_v26 = vpack.c.bf16 %v173_v24, %v172_v23  ;;  %v286_v52 = vld [vmem:[#allocation6] sm:$0xff] }
  0x39   :  { %558 = vmatpush3.bf16.msra.mxu0 %v557_v5  ;;  %v71_v11 = vsub.s32 0, %v773_v10  ;;  %v175_v27 = vld [vmem:[#allocation4 + $0x18] sm:$0xff]  ;;  %v163_v32 = vsub.s32 1, %v773_v10  ;;  %v168_v33 = vsub.s32 2, %v773_v10  ;;  %v178_v41 = vsub.s32 3, %v773_v10  ;;  %v287_v53 = vld [vmem:[#allocation6 + $0x8] sm:$0xff] }
  0x3a   :  { %559 = vmatprep.subr.bf16.mxu0 %v673_v0  ;;  %564 = vmatpush3.bf16.msra.mxu1 %v563_v26  ;;  %v566_v28 = vpack.c.bf16 %v175_v27, %v174_v25  ;;  %v288_v54 = vld [vmem:[#allocation6 + $0x10] sm:$0xff]  ;;  %v569_v55 = vpack.c.bf16 %v287_v53, %v286_v52  ;;  %v289_v56 = vld [vmem:[#allocation6 + $0x18] sm:$0xff]  ;;  %v276_v3 = vsub.s32 4, %v773_v10  ;;  %v281_v4 = vsub.s32 5, %v773_v10 }
  0x3b   :  { %v72_v13 = vrot.slane %v779_v12, %v71_v11  ;;  %565 = vmatprep.subr.bf16.mxu1 %v673_v0  ;;  %v164_v34 = vrot.slane %v779_v12, %v163_v32  ;;  %v169_v37 = vrot.slane %v779_v12, %v168_v33  ;;  %v179_v42 = vrot.slane %v779_v12, %v178_v41  ;;  %v399_v27 = vld [vmem:[%s841_s5] sm:$0xff] }
  0x3c   :  { %v572_v57 = vpack.c.bf16 %v289_v56, %v288_v54  ;;  %v277_v5 = vrot.slane %v779_v12, %v276_v3 }
  0x3d   :  { %561 = vmatpush3.bf16.msra.mxu0 %v560_v7 }
  0x3e   :  { %568 = vmatprep.subr.bf16.mxu0 %v673_v0  ;;  %567 = vmatpush3.bf16.msra.mxu1 %v566_v28  ;;  %v400_v28 = vld [vmem:[%s841_s5 + $0x8] sm:$0xff] }
  0x3f   :  { %574 = vmatprep.subr.bf16.mxu1 %v673_v0 }
  0x40   :  { %521 = vmatmul.mubr.msk.f32.vlgmr.msra.gmra.mrb[0].mxu0 %vm73_vm1, %v64_v8  ;;  %v282_v8 = vrot.slane %v779_v12, %v281_v4 }
  0x41   :  { %542 = vmatprep.mubr.msk.f32.mxu0 %vm674_vm0, %v675_v1  ;;  %570 = vmatpush3.bf16.msra.mxu0 %v569_v55 }
  0x42   :  { %571 = vmatprep.subr.bf16.mxu0 %v673_v0 }
  0x45   :  { %573 = vmatpush3.bf16.msra.mxu0 %v572_v57 }
 0x113   :  { %v143_v14 = vpop.f32.mrb[0].mxu0 }
 0x114   :  { %v144_v15 = vadd.f32 %v143_v14, %v72_v13  ;;  %v522_v16 = vpop.f32.mrb[1].mxu0 }
 0x115   :  { %v292_v16 = vsub.s32 6, %v773_v10 }
 0x116   :  { %v147_v17 = vsel %vm73_vm1, %v144_v15, 0.0 }
 0x117   :  { %148 = vadd.xlane.f32.xlu0 %v147_v17  ;;  %v293_v17 = vrot.slane %v779_v12, %v292_v16 }
 0x1a4   :  { %v149_v18 = vpop.xlane.xlu0 %148 }
 0x1a5   :  { %v151_v19 = vmul.f32 0.03125, %v149_v18 }
 0x1a7   :  { %v152_v20 = vsub.f32 %v144_v15, %v151_v19 }
 0x1a9   :  { %v153_v21 = vmul.f32 %v152_v20, %v152_v20 }
 0x1ab   :  { %v154_v22 = vsel %vm73_vm1, %v153_v21, 0.0 }
 0x1ac   :  { %155 = vadd.xlane.f32.xlu0 %v154_v22 }
 0x239   :  { %v156_v29 = vpop.xlane.xlu0 %155 }
 0x23a   :  { %v157_v30 = vmul.f32 0.03125, %v156_v29  ;;  %v401_v29 = vld [vmem:[%s841_s5 + $0x10] sm:$0xff] }
 0x23c   :  { %v158_v31 = vadd.f32 1e-05, %v157_v30  ;;  %v575_v30 = vpack.c.bf16 %v400_v28, %v399_v27 }
 0x23e   :  { %588 = vrsqrt.f32 %v158_v31  ;;  %v402_v31 = vld [vmem:[%s841_s5 + $0x18] sm:$0xff] }
 0x23f   :  { %v578_v33 = vpack.c.bf16 %v402_v31, %v401_v29 }
 0x248   :  { %v589_v35 = vpop.eup %588 }
 0x249   :  { %v160_v36 = vmul.f32 %v589_v35, %v152_v20 }
 0x24b   :  { %v165_v38 = vmul.f32 %v164_v34, %v160_v36 }
 0x24d   :  { %v170_v39 = vadd.f32 %v169_v37, %v165_v38 }
 0x24f   :  { %v171_v40 = vmax.f32 %v170_v39, 0.0 }
 0x251   :  { %532 = vmatmul.mubr.msk.f32.vlgmr.msra.gmra.mrb[0].mxu1 %vm73_vm1, %v171_v40 }
 0x252   :  { %553 = vmatprep.mubr.msk.f32.mxu1 %vm674_vm0, %v675_v1  ;;  %576 = vmatpush3.bf16.msra.mxu1 %v575_v30 }
 0x253   :  { %577 = vmatprep.subr.bf16.mxu1 %v673_v0 }
 0x256   :  { %579 = vmatpush3.bf16.msra.mxu1 %v578_v33 }
 0x324   :  { %v249_v43 = vpop.f32.mrb[0].mxu1 }
 0x325   :  { %v250_v44 = vadd.f32 %v249_v43, %v179_v42  ;;  %v533_v45 = vpop.f32.mrb[1].mxu1  ;;  %v389_v42 = vsub.s32 7, %v773_v10  ;;  %v63_v43 = vld [vmem:[%s838_s2 + $0x8] sm:$0xff] }
 0x326   :  { %v395_v45 = vrot.slane %v63_v43, %v71_v11 }
 0x327   :  { %v253_v46 = vsel %vm73_vm1, %v250_v44, 0.0  ;;  %v390_v0 = vrot.slane %v779_v12, %v389_v42 }
 0x328   :  { %254 = vadd.xlane.f32.xlu1 %v253_v46 }
 0x3b5   :  { %v255_v47 = vpop.xlane.xlu1 %254 }
 0x3b6   :  { %v256_v48 = vmul.f32 0.03125, %v255_v47 }
 0x3b8   :  { %v257_v49 = vsub.f32 %v250_v44, %v256_v48 }
 0x3ba   :  { %v258_v50 = vmul.f32 %v257_v49, %v257_v49 }
 0x3bc   :  { %v259_v51 = vsel %vm73_vm1, %v258_v50, 0.0 }
 0x3bd   :  { %260 = vadd.xlane.f32.xlu1 %v259_v51  ;;  %v406_v51 = vrot.slane %v63_v43, %v163_v32 }
 0x44a   :  { %v261_v58 = vpop.xlane.xlu1 %260 }
 0x44b   :  { %v263_v59 = vmul.f32 0.032258064, %v261_v58 }
 0x44d   :  { %590 = vrsqrt.f32 %v263_v59  ;;  %vm266_vm2 = vcmp.eq.f32.partialorder %v263_v59, inf  ;;  %v269_v62 = vand.u32 2147483648, %v263_v59  ;;  %vm268_vm3 = vcmp.eq.f32.partialorder %v263_v59, 0.0 }
 0x457   :  { %v591_v60 = vpop.eup %590 }
 0x458   :  { %v265_v61 = vmul.f32 %v591_v60, %v263_v59 }
 0x45a   :  { %v267_v63 = vsel %vm266_vm2, %v263_v59, %v265_v61 }
 0x45b   :  { %v270_v1 = vsel %vm268_vm3, %v269_v62, %v267_v63 }
 0x45c   :  { %v271_v2 = vadd.f32 1e-06, %v270_v1 }
 0x45e   :  { %592 = vrcp.f32 %v271_v2 }
 0x468   :  { %v593_v6 = vpop.eup %592 }
 0x469   :  { %v273_v7 = vmul.f32 %v593_v6, %v257_v49 }
 0x46b   :  { %v278_v9 = vmul.f32 %v277_v5, %v273_v7 }
 0x46d   :  { %v283_v13 = vadd.f32 %v282_v8, %v278_v9 }
 0x46f   :  { %v284_v14 = vadd.f32 %v283_v13, %v250_v44 }
 0x471   :  { %v285_v15 = vmax.f32 %v284_v14, 0.0 }
 0x473   :  { %543 = vmatmul.mubr.msk.f32.vlgmr.msra.gmra.mrb[2].mxu0 %vm73_vm1, %v285_v15 }
 0x546   :  { %v363_v18 = vpop.f32.mrb[2].mxu0 }
 0x547   :  { %v364_v19 = vadd.f32 %v363_v18, %v293_v17  ;;  %v544_v20 = vpop.f32.mrb[3].mxu0 }
 0x549   :  { %v367_v21 = vsel %vm73_vm1, %v364_v19, 0.0 }
 0x54a   :  { %368 = vadd.xlane.f32.xlu0 %v367_v21 }
 0x5d7   :  { %v369_v22 = vpop.xlane.xlu0 %368 }
 0x5d8   :  { %v370_v23 = vmul.f32 0.03125, %v369_v22 }
 0x5da   :  { %v371_v24 = vsub.f32 %v364_v19, %v370_v23 }
 0x5dc   :  { %v372_v25 = vmul.f32 %v371_v24, %v371_v24 }
 0x5de   :  { %v373_v26 = vsel %vm73_vm1, %v372_v25, 0.0 }
 0x5df   :  { %374 = vadd.xlane.f32.xlu1 %v373_v26 }
 0x66c   :  { %v375_v34 = vpop.xlane.xlu1 %374 }
 0x66d   :  { %v376_v35 = vmul.f32 0.032258064, %v375_v34 }
 0x66f   :  { %594 = vrsqrt.f32 %v376_v35  ;;  %vm379_vm4 = vcmp.eq.f32.partialorder %v376_v35, inf  ;;  %v382_v38 = vand.u32 2147483648, %v376_v35  ;;  %vm381_vm5 = vcmp.eq.f32.partialorder %v376_v35, 0.0 }
 0x679   :  { %v595_v36 = vpop.eup %594 }
 0x67a   :  { %v378_v37 = vmul.f32 %v595_v36, %v376_v35 }
 0x67c   :  { %v380_v39 = vsel %vm379_vm4, %v376_v35, %v378_v37 }
 0x67d   :  { %v383_v40 = vsel %vm381_vm5, %v382_v38, %v380_v39 }
 0x67e   :  { %v384_v41 = vadd.f32 1e-06, %v383_v40 }
 0x680   :  { %596 = vrcp.f32 %v384_v41 }
 0x68a   :  { %v597_v44 = vpop.eup %596 }
 0x68b   :  { %v386_v46 = vmul.f32 %v597_v44, %v371_v24 }
 0x68d   :  { %v391_v47 = vmul.f32 %v390_v0, %v386_v46 }
 0x68f   :  { %v396_v48 = vadd.f32 %v395_v45, %v391_v47 }
 0x691   :  { %v397_v49 = vadd.f32 %v396_v48, %v364_v19 }
 0x693   :  { %v398_v50 = vmax.f32 %v397_v49, 0.0 }
 0x695   :  { %554 = vmatmul.mubr.msk.f32.vlgmr.msra.gmra.mrb[2].mxu1 %vm73_vm1, %v398_v50 }
 0x768   :  { %v476_v52 = vpop.f32.mrb[2].mxu1 }
 0x769   :  { %v477_v53 = vadd.f32 %v476_v52, %v406_v51  ;;  %v555_v54 = vpop.f32.mrb[3].mxu1 }
 0x76b   :  { %481 = vst.msk [vmem:[%s842_s6] sm:$0xff] %vm480_vm6, %v477_v53 }
 0x76c   :  { %486 = vsyncpa [#allocation3], 1 }
 0x76d   :  { %487 = vsyncpa [#allocation5], 1 }

</bundles_post_ra>
